<compile_context>
chip_gen: v5e
topology: v5e:2x2
jax: 0.10.0
libtpu: 0.0.40
codegen_flags: <defaults>
</compile_context>

<pallas_src>
import jax
import jax.numpy as jnp
from jax import lax
from jax.experimental import pallas as pl
from jax.experimental.pallas import tpu as pltpu

_EPS = 1e-5  # torch.nn.LayerNorm default


def _ln_affine_kernel(x_ref, scale_ref, bias_ref, o_ref):
    # x_ref: (R, L) block of independent rows; scale/bias: (R, 1) f32 per-row.
    x = x_ref[...].astype(jnp.float32)
    mean = jnp.mean(x, axis=-1, keepdims=True)          # XLU reduction
    xc = x - mean                                       # center once
    var = jnp.mean(xc * xc, axis=-1, keepdims=True)     # population variance
    inv = lax.rsqrt(var + _EPS)                         # EUP
    s = inv * scale_ref[...]                            # fuse scale into inv (per row)
    o_ref[...] = (xc * s + bias_ref[...]).astype(o_ref.dtype)


def layer_norm_affine_1d(x, scale, bias, *, block_rows=None):
    """x: [N, C, L]; scale, bias: [1, C, 1]. Returns [N, C, L]."""
    N, C, L = x.shape
    rows = N * C

    # Row-major flatten: row r == (n = r // C, c = r % C).
    x2 = x.reshape(rows, L)
    scale_rows = jnp.broadcast_to(
        scale.reshape(1, C).astype(jnp.float32), (N, C)).reshape(rows, 1)
    bias_rows = jnp.broadcast_to(
        bias.reshape(1, C).astype(jnp.float32), (N, C)).reshape(rows, 1)

    if block_rows is None:
        itemsize = jnp.dtype(x.dtype).itemsize
        # Target ~4 MiB per input block (double-buffered in+out stays well
        # under the 48 MiB scoped VMEM limit on every generation, incl. v7x).
        target_rows = max(8, (4 * 1024 * 1024) // max(L * itemsize, 1))
        block_rows = min(rows, target_rows)
        if rows > 8:
            # Keep at least 2 grid steps so both v7x TensorCores get work.
            block_rows = min(block_rows, pl.cdiv(rows, 2))
        if block_rows >= 8:
            # Align to the 8-sublane f32 tile.
            block_rows = (block_rows // 8) * 8
    block_rows = max(1, min(block_rows, rows))

    grid = (pl.cdiv(rows, block_rows),)

    out2 = pl.pallas_call(
        _ln_affine_kernel,
        out_shape=jax.ShapeDtypeStruct((rows, L), x.dtype),
        grid_spec=pltpu.PrefetchScalarGridSpec(
            num_scalar_prefetch=0,
            grid=grid,
            in_specs=[
                pl.BlockSpec((block_rows, L), lambda i: (i, 0)),
                pl.BlockSpec((block_rows, 1), lambda i: (i, 0)),
                pl.BlockSpec((block_rows, 1), lambda i: (i, 0)),
            ],
            out_specs=pl.BlockSpec((block_rows, L), lambda i: (i, 0)),
        ),
        compiler_params=pltpu.CompilerParams(
            dimension_semantics=("parallel",),
            vmem_limit_bytes=48 * 1024 * 1024,
        ),
    )(x2, scale_rows, bias_rows)

    return out2.reshape(N, C, L)


def _reference(x, scale, bias):
    xf = x.astype(jnp.float32)
    mean = jnp.mean(xf, axis=-1, keepdims=True)
    var = jnp.mean((xf - mean) ** 2, axis=-1, keepdims=True)
    y = (xf - mean) / jnp.sqrt(var + _EPS)
    return (y * scale + bias).astype(x.dtype)


if __name__ == "__main__":
    # Module config: num_ch = C, norm_shape = L (last dim)
    N, C, L = 2, 4, 32

    key = jax.random.PRNGKey(0)
    kx, ks, kb = jax.random.split(key, 3)
    x = jax.random.normal(kx, (N, C, L), dtype=jnp.float32)

    # 1) Exact LayerNormAffine1D.__init__ (zero_init=False): scale=1, bias=0.
    scale = jnp.ones((1, C, 1), dtype=jnp.float32)
    bias = jnp.zeros((1, C, 1), dtype=jnp.float32)
    out = jax.block_until_ready(layer_norm_affine_1d(x, scale, bias))
    ref = _reference(x, scale, bias)
    assert out.shape == (N, C, L)
    assert jnp.allclose(out, ref, atol=1e-5, rtol=1e-5), "mismatch (init params)"

    # 2) Non-trivial scale/bias to exercise the per-channel affine broadcast.
    scale2 = jax.random.normal(ks, (1, C, 1), dtype=jnp.float32)
    bias2 = jax.random.normal(kb, (1, C, 1), dtype=jnp.float32)
    out2 = jax.block_until_ready(layer_norm_affine_1d(x, scale2, bias2))
    ref2 = _reference(x, scale2, bias2)
    assert jnp.allclose(out2, ref2, atol=1e-5, rtol=1e-5), "mismatch (random affine)"

    print("KERNEL_OK")
</pallas_src>

<mosaic_0001>
module attributes {stable_mosaic.version = 11 : i64} {
  func.func @_ln_affine_kernel(%arg0: i32, %arg1: memref<8x32xf32, #tpu.memory_space<vmem>>, %arg2: memref<8x1xf32, #tpu.memory_space<vmem>>, %arg3: memref<8x1xf32, #tpu.memory_space<vmem>>, %arg4: memref<8x32xf32, #tpu.memory_space<vmem>>) attributes {dimension_semantics = [#tpu.dimension_semantics<parallel>], iteration_bounds = array<i64: 1>, scalar_prefetch = 0 : i64, scratch_operands = 0 : i64, tpu.core_type = #tpu.core_type<tc>, window_params = [{transform_indices = @transform_0, window_bounds = array<i64: 8, 32>}, {transform_indices = @transform_1, window_bounds = array<i64: 8, 1>}, {transform_indices = @transform_2, window_bounds = array<i64: 8, 1>}, {transform_indices = @transform_3, window_bounds = array<i64: 8, 32>}]} {
    %c0 = arith.constant 0 : index
    %c0_0 = arith.constant 0 : index
    %0 = vector.load %arg1[%c0, %c0_0] : memref<8x32xf32, #tpu.memory_space<vmem>>, vector<8x32xf32>
    %cst = arith.constant dense<0.000000e+00> : vector<8xf32>
    %1 = vector.multi_reduction <add>, %0, %cst [1] : vector<8x32xf32> to vector<8xf32>
    %2 = vector.shape_cast %1 : vector<8xf32> to vector<8x1xf32>
    %cst_1 = arith.constant 3.200000e+01 : f32
    %3 = vector.broadcast %cst_1 : f32 to vector<8x1xf32>
    %4 = arith.divf %2, %3 : vector<8x1xf32>
    %5 = vector.broadcast %4 : vector<8x1xf32> to vector<8x32xf32>
    %6 = arith.subf %0, %5 : vector<8x32xf32>
    %7 = arith.mulf %6, %6 : vector<8x32xf32>
    %cst_2 = arith.constant dense<0.000000e+00> : vector<8xf32>
    %8 = vector.multi_reduction <add>, %7, %cst_2 [1] : vector<8x32xf32> to vector<8xf32>
    %9 = vector.shape_cast %8 : vector<8xf32> to vector<8x1xf32>
    %cst_3 = arith.constant 3.200000e+01 : f32
    %10 = vector.broadcast %cst_3 : f32 to vector<8x1xf32>
    %11 = arith.divf %9, %10 : vector<8x1xf32>
    %cst_4 = arith.constant 9.99999974E-6 : f32
    %12 = vector.broadcast %cst_4 : f32 to vector<8x1xf32>
    %13 = arith.addf %11, %12 : vector<8x1xf32>
    %14 = math.rsqrt %13 : vector<8x1xf32>
    %c0_5 = arith.constant 0 : index
    %c0_6 = arith.constant 0 : index
    %15 = vector.load %arg2[%c0_5, %c0_6] : memref<8x1xf32, #tpu.memory_space<vmem>>, vector<8x1xf32>
    %16 = arith.mulf %14, %15 : vector<8x1xf32>
    %17 = vector.broadcast %16 : vector<8x1xf32> to vector<8x32xf32>
    %18 = arith.mulf %6, %17 : vector<8x32xf32>
    %c0_7 = arith.constant 0 : index
    %c0_8 = arith.constant 0 : index
    %19 = vector.load %arg3[%c0_7, %c0_8] : memref<8x1xf32, #tpu.memory_space<vmem>>, vector<8x1xf32>
    %20 = vector.broadcast %19 : vector<8x1xf32> to vector<8x32xf32>
    %21 = arith.addf %18, %20 : vector<8x32xf32>
    %c0_9 = arith.constant 0 : index
    %c0_10 = arith.constant 0 : index
    %22 = vector.load %arg4[%c0_9, %c0_10] : memref<8x32xf32, #tpu.memory_space<vmem>>, vector<8x32xf32>
    tpu.vector_store %arg4[%c0_9, %c0_10], %21 {strides = array<i32>} : memref<8x32xf32, #tpu.memory_space<vmem>>, vector<8x32xf32>,
    return
  }
  func.func @transform_0(%arg0: i32) -> (i32, i32) {
    %c0_i32 = arith.constant 0 : i32
    %c0_i32_0 = arith.constant 0 : i32
    return %arg0, %c0_i32 : i32, i32
  }
  func.func @transform_1(%arg0: i32) -> (i32, i32) {
    %c0_i32 = arith.constant 0 : i32
    %c0_i32_0 = arith.constant 0 : i32
    return %arg0, %c0_i32 : i32, i32
  }
  func.func @transform_2(%arg0: i32) -> (i32, i32) {
    %c0_i32 = arith.constant 0 : i32
    %c0_i32_0 = arith.constant 0 : i32
    return %arg0, %c0_i32 : i32, i32
  }
  func.func @transform_3(%arg0: i32) -> (i32, i32) {
    %c0_i32 = arith.constant 0 : i32
    %c0_i32_0 = arith.constant 0 : i32
    return %arg0, %c0_i32 : i32, i32
  }
}

</mosaic_0001>

<bundles_post_ra>
// kernel: tpu_custom_call.1
= control target key start
LH: loop header
LB: loop body
LE: loop exit
PB: predicated region body
PF: predicated region fallthrough
CT: control target
= control target key end

     0   :  { %vm16_vm0 = vcmask 261120   ;;  %s150_s0 = inlined_call_operand.vmem [shape: f32[8,32], index: 0, kind: input, shape index: {}]   ;;  %s151_s1 = inlined_call_operand.vmem [shape: f32[8,1], index: 1, kind: input, shape index: {}]   ;;  %s152_s2 = inlined_call_operand.vmem [shape: f32[8,1], index: 2, kind: input, shape index: {}]   ;;  %s153_s3 = inlined_call_operand.hbm [shape: f32[8,32], index: 3, kind: output, shape index: {}]  }
   0x1   :  { %v15_v0 = vld [vmem:[%s150_s0] sm:$0xff] }
   0x2   :  { %8 = vsyncpa [#allocation3], 0  ;;  %v17_v1 = vsel %vm16_vm0, %v15_v0, 0.0  ;;  %v112_v2 = vmov 32.0   ;;  %v113_v14 = vmov 0   ;;  %v45_v24 = vld [vmem:[%s151_s1] sm:$0xff] }
   0x3   :  { %18 = vadd.xlane.f32.xlu0 %v17_v1  ;;  %82 = vrcp.f32 %v112_v2  ;;  %80 = vset.pattern.permute.xlu1 %v113_v14  ;;  %v53_v27 = vld [vmem:[%s152_s2] sm:$0xff]  ;;  %s114_s17 = smov [#allocation2]   ;;  %s68_s21 = sshll.u32 %s153_s3, 4  ;;  %s69_s21 = int_to_ptr.hbm [resolvable:$true] %s68_s21 }
   0x4   :  { %81 = vset.pattern.permute.xlu0 %v113_v14  ;;  %s66_s18 = sshll.u32 %s114_s17, 4  ;;  %s67_s18 = int_to_ptr.vmem [resolvable:$true] %s66_s18 }
   0x9   :  { %v83_v3 = vpop.eup %82 }
   0xa   :  { %v21_v4 = vmul.f32 32.0, %v83_v3  ;;  %vm25_vm1 = vweird.f32 %v83_v3 }
   0xc   :  { %v22_v5 = vsub.f32 1.0, %v21_v4 }
   0xe   :  { %v23_v6 = vmul.f32 %v83_v3, %v22_v5 }
  0x10   :  { %v24_v7 = vadd.f32 %v83_v3, %v23_v6 }
  0x12   :  { %v26_v8 = vsel %vm25_vm1, %v83_v3, %v24_v7 }
  0x76   :  { %v19_v9 = vpop.xlane.xlu0 %18 }
  0x77   :  { %v27_v10 = vmul.f32 %v26_v8, %v19_v9 }
  0x79   :  { %v28_v11 = vsub.f32 %v15_v0, %v27_v10 }
  0x7b   :  { %v29_v12 = vmul.f32 %v28_v11, %v28_v11 }
  0x7d   :  { %v30_v13 = vsel %vm16_vm0, %v29_v12, 0.0 }
  0x7e   :  { %31 = vadd.xlane.f32.xlu0 %v30_v13 }
  0xf1   :  { %v32_v15 = vpop.xlane.xlu0 %31 }
  0xf2   :  { %v33_v16 = vmul.f32 %v32_v15, %v26_v8 }
  0xf4   :  { %v34_v17 = vadd.f32 1e-05, %v33_v16 }
  0xf6   :  { %84 = vrsqrt.f32 %v34_v17  ;;  %vm41_vm3 = vweird.f32 %v34_v17 }
  0xfc   :  { %v85_v18 = vpop.eup %84 }
  0xfd   :  { %v36_v19 = vmul.f32 %v85_v18, %v34_v17  ;;  %vm42_vm2 = vweird.f32 %v85_v18 }
  0xfe   :  { %vm43_vm4 = vmor %vm41_vm3, %vm42_vm2 }
  0xff   :  { %v37_v20 = vmul.f32 %v85_v18, %v36_v19 }
 0x101   :  { %v38_v21 = vmul.f32 0.5, %v37_v20 }
 0x103   :  { %v39_v22 = vsub.f32 1.5, %v38_v21 }
 0x105   :  { %v40_v23 = vmul.f32 %v85_v18, %v39_v22 }
 0x107   :  { %v44_v25 = vsel %vm43_vm4, %v85_v18, %v40_v23 }
 0x108   :  { %v46_v26 = vmul.f32 %v45_v24, %v44_v25 }
 0x10a   :  { %49 = vperm.xlu1 %80, %v46_v26  }
 0x112   :  { %56 = vperm.xlu1 %80, %v53_v27  }
 0x17c   :  { %v50_v28 = vpop.permute.xlu1 %49 }
 0x17d   :  { %v52_v29 = vmul.f32 %v50_v28, %v28_v11 }
 0x184   :  { %v57_v30 = vpop.permute.xlu1 %56 }
 0x185   :  { %v59_v31 = vadd.f32 %v57_v30, %v52_v29 }
 0x187   :  { %60 = vst.msk [vmem:[#allocation2] sm:$0xff] %vm16_vm0, %v59_v31 }
 0x188   :  { %71 = dma.vmem_to_hbm [thread:$0]  %s67_s18, 128, %s69_s21, [#allocation3]  }
 0x189   :  { %110 = dma.done.wait [#allocation3], 128  }
 0x18a   :  { %111 = vsyncadd [#allocation3], 4294967168 }
 0x18b   :  { %76 = vsyncpa [#allocation3], 1 }

</bundles_post_ra>
